<compile_context>
chip_gen: v7x
topology: tpu7x:2x2x1
jax: 0.10.0
libtpu: 0.0.40
codegen_flags: <defaults>
</compile_context>

<pallas_src>
import jax
import jax.numpy as jnp
from jax import lax
from jax.experimental import pallas as pl
from jax.experimental.pallas import tpu as pltpu

BN_EPS = 1e-5  # PyTorch BatchNorm1d default


def _round_up(a, b):
    return (a + b - 1) // b * b


def _conv_stats_kernel(p_ref, w_ref, z_ref, s_ref):
    """Pass 1: conv matmul; write z tile + sublane-preserving per-tile sum / sumsq."""
    z = jnp.dot(p_ref[...], w_ref[...], preferred_element_type=jnp.float32)  # (TM, C) f32
    z_ref[...] = z.astype(z_ref.dtype)
    # Sublane-preserving accumulation: (TM, C) -> (TM//8, 8, C), add over the leading axis.
    # Pure VPU elementwise adds (no XLU cross-sublane reduce, no masked partial stores).
    zr = z.reshape(z.shape[0] // 8, 8, z.shape[1])
    s_ref[0, 0, :, :] = jnp.sum(zr, axis=0)
    s_ref[0, 1, :, :] = jnp.sum(zr * zr, axis=0)


def _bn_relu_kernel(z_ref, scale_ref, shift_ref, o_ref):
    """Pass 2: elementwise folded-BN affine + ReLU over the stored conv output."""
    z = z_ref[...].astype(jnp.float32)
    o_ref[...] = jnp.maximum(z * scale_ref[...] + shift_ref[...], 0.0).astype(o_ref.dtype)


def conv1d_bn_relu(x, weight, bias, gamma, beta, *, stride, padding,
                   tile_m=1024, matmul_dtype=jnp.bfloat16, z_dtype=jnp.float32,
                   c_align=128):
    """x: (N, C_in, L) f32 -> (N, C_out, L_out) f32, matching the PyTorch module
    (Conv1d -> BatchNorm1d(training-mode batch stats) -> ReLU).

    z_dtype: dtype for the intermediate conv output round-tripped through HBM between
    the two passes (f32 = exact, bf16 = half the round-trip bytes)."""
    N, C_in, L = x.shape
    C_out, C_in_w, K = weight.shape
    assert C_in_w == C_in
    L_out = (L + 2 * padding - K) // stride + 1
    M = N * L_out
    CK = C_in * K

    # --- wrapper glue: bf16 channels-last window gather (no f32 slab, no extra transpose) ---
    xt = jnp.transpose(x.astype(matmul_dtype), (0, 2, 1))                 # (N, L, C_in)
    xt = jnp.pad(xt, ((0, 0), (padding, padding), (0, 0)))
    idx = jnp.arange(L_out)[:, None] * stride + jnp.arange(K)[None, :]    # (L_out, K)
    patches = xt[:, idx, :].reshape(M, CK)                                # (M, K*C_in), (k, c) order

    # --- padding / tiling ---
    CK_pad = _round_up(CK, 16)              # sublane-align only; NOT padded to 128 lanes
    C_out_pad = _round_up(C_out, c_align)   # lane-dense z / output stores
    TM = min(_round_up(tile_m, 16), _round_up(M, 16))

    itm = jnp.dtype(matmul_dtype).itemsize
    z_itm = jnp.dtype(z_dtype).itemsize

    def _vmem_footprint(tm):
        return (2 * tm * CK_pad * itm             # patches (double-buffered)
                + 2 * CK_pad * C_out_pad * itm    # weight (constant block; 2 buffers)
                + 2 * tm * C_out_pad * z_itm      # z tile (pass-1 out / pass-2 in)
                + 2 * tm * C_out_pad * 4          # pass-2 f32 output tile
                + 2 * 2 * 8 * C_out_pad * 4       # per-tile stats
                + 2 * 2 * C_out_pad * 4)          # scale / shift

    VMEM_BUDGET = 32 * 1024 * 1024                # comfortable on v7x's 64 MiB / v6e's 128 MiB
    while _vmem_footprint(TM) > VMEM_BUDGET and TM > 256:
        TM = _round_up(TM // 2, 16)
    M_pad = _round_up(M, TM)
    n_tiles = M_pad // TM
    vmem_limit = int(min(max(_vmem_footprint(TM) + (4 << 20), 16 << 20), 48 << 20))

    patches = jnp.pad(patches, ((0, M_pad - M), (0, CK_pad - CK)))
    w2 = jnp.pad(jnp.transpose(weight, (2, 1, 0)).reshape(CK, C_out),
                 ((0, CK_pad - CK), (0, C_out_pad - C_out))).astype(matmul_dtype)
    # Conv bias cancels exactly under training-mode BatchNorm -> dropped (dead math/DMA).
    del bias
    gamma_p = jnp.pad(gamma.astype(jnp.float32), (0, C_out_pad - C_out))
    beta_p = jnp.pad(beta.astype(jnp.float32), (0, C_out_pad - C_out))

    mm_flops = 2 * M_pad * CK_pad * C_out_pad
    patch_bytes = M_pad * CK_pad * itm
    w_bytes = CK_pad * C_out_pad * itm
    z_bytes = M_pad * C_out_pad * z_itm
    stats_bytes = n_tiles * 2 * 8 * C_out_pad * 4

    # ---- pass 1: conv matmul + per-tile partial stats (fully parallel over M-tiles) ----
    z, stats = pl.pallas_call(
        _conv_stats_kernel,
        out_shape=(jax.ShapeDtypeStruct((M_pad, C_out_pad), z_dtype),
                   jax.ShapeDtypeStruct((n_tiles, 2, 8, C_out_pad), jnp.float32)),
        grid_spec=pltpu.PrefetchScalarGridSpec(
            num_scalar_prefetch=0,
            grid=(n_tiles,),
            in_specs=[
                pl.BlockSpec((TM, CK_pad), lambda i: (i, 0)),
                pl.BlockSpec((CK_pad, C_out_pad), lambda i: (0, 0)),
            ],
            out_specs=(
                pl.BlockSpec((TM, C_out_pad), lambda i: (i, 0)),
                pl.BlockSpec((1, 2, 8, C_out_pad), lambda i: (i, 0, 0, 0)),
            ),
        ),
        compiler_params=pltpu.CompilerParams(
            dimension_semantics=("parallel",),     # no resident accumulator -> megacore-shardable
            vmem_limit_bytes=vmem_limit),
        cost_estimate=pl.CostEstimate(
            flops=mm_flops + 3 * M_pad * C_out_pad, transcendentals=0,
            bytes_accessed=patch_bytes + w_bytes + z_bytes + stats_bytes),
    )(patches, w2)

    # finalize BN stats (tiny per-channel math, plain JAX).
    # Zero-padded patch rows / CK columns produce exactly-zero z -> divide by the TRUE M.
    s = jnp.sum(stats, axis=(0, 2))               # (2, C_out_pad)
    mean = s[0] / M
    var = jnp.maximum(s[1] / M - mean * mean, 0.0)
    inv = lax.rsqrt(var + BN_EPS)
    scale = (gamma_p * inv).reshape(1, C_out_pad)
    shift = (beta_p - mean * gamma_p * inv).reshape(1, C_out_pad)

    # ---- pass 2: elementwise scale/shift + ReLU over stored z (no matmul recompute) ----
    out2 = pl.pallas_call(
        _bn_relu_kernel,
        out_shape=jax.ShapeDtypeStruct((M_pad, C_out_pad), jnp.float32),
        grid_spec=pltpu.PrefetchScalarGridSpec(
            num_scalar_prefetch=0,
            grid=(n_tiles,),
            in_specs=[
                pl.BlockSpec((TM, C_out_pad), lambda i: (i, 0)),
                pl.BlockSpec((1, C_out_pad), lambda i: (0, 0)),
                pl.BlockSpec((1, C_out_pad), lambda i: (0, 0)),
            ],
            out_specs=pl.BlockSpec((TM, C_out_pad), lambda i: (i, 0)),
        ),
        compiler_params=pltpu.CompilerParams(
            dimension_semantics=("parallel",),
            vmem_limit_bytes=vmem_limit),
        cost_estimate=pl.CostEstimate(
            flops=3 * M_pad * C_out_pad, transcendentals=0,
            bytes_accessed=z_bytes + M_pad * C_out_pad * 4 + 2 * C_out_pad * 4),
    )(z, scale, shift)

    # back to the PyTorch layout (N, C_out, L_out).
    # (Returning channels-last / bf16 would save an HBM pass if the consumer tolerates it.)
    out = out2[:M, :C_out].reshape(N, L_out, C_out)
    return jnp.transpose(out, (0, 2, 1))


def _reference(x, weight, bias, gamma, beta, *, stride, padding):
    """Pure-JAX reference for the same forward pass (training-mode BN)."""
    z = lax.conv_general_dilated(
        x, weight,
        window_strides=(stride,),
        padding=[(padding, padding)],
        dimension_numbers=("NCH", "OIH", "NCH"),
    ) + bias[None, :, None]
    mean = jnp.mean(z, axis=(0, 2), keepdims=True)
    var = jnp.mean((z - mean) ** 2, axis=(0, 2), keepdims=True)
    y = (z - mean) * lax.rsqrt(var + BN_EPS)
    y = y * gamma[None, :, None] + beta[None, :, None]
    return jnp.maximum(y, 0.0)


def _run_case(key, N, C_in, L, C_out, K, stride, padding, *, tile_m,
              z_dtype=jnp.float32, random_affine=False, atol=2e-4, rtol=2e-4):
    kx, kw, kb, kg, kbt = jax.random.split(key, 5)
    x = jax.random.normal(kx, (N, C_in, L), dtype=jnp.float32)

    fan_in = C_in * K
    bound = 1.0 / float(fan_in) ** 0.5
    weight = jax.random.uniform(kw, (C_out, C_in, K), jnp.float32, -bound, bound)
    bias = jax.random.uniform(kb, (C_out,), jnp.float32, -bound, bound)
    if random_affine:
        gamma = 0.5 + jax.random.uniform(kg, (C_out,), jnp.float32, 0.0, 1.0)
        beta = jax.random.normal(kbt, (C_out,), jnp.float32)
    else:
        gamma = jnp.ones((C_out,), jnp.float32)   # BatchNorm1d default init
        beta = jnp.zeros((C_out,), jnp.float32)

    # Round x/weight through bf16 so the f32 reference consumes exactly the values the
    # bf16 MXU path sees (keeps the comparison tight; products are exact in f32 accumulate).
    x = x.astype(jnp.bfloat16).astype(jnp.float32)
    weight = weight.astype(jnp.bfloat16).astype(jnp.float32)

    out = conv1d_bn_relu(x, weight, bias, gamma, beta,
                         stride=stride, padding=padding, tile_m=tile_m, z_dtype=z_dtype)
    out = jax.block_until_ready(out)

    ref = _reference(x, weight, bias, gamma, beta, stride=stride, padding=padding)
    L_out = (L + 2 * padding - K) // stride + 1
    assert out.shape == (N, C_out, L_out)
    assert jnp.allclose(out, ref, atol=atol, rtol=rtol), "mismatch vs reference"


if __name__ == "__main__":
    key = jax.random.PRNGKey(0)
    k1, k2 = jax.random.split(key)

    # Module hyper-params (small, deterministic) — single-tile path, f32 z (exact, tight tol).
    _run_case(k1, N=2, C_in=4, L=16, C_out=8, K=3, stride=2, padding=1, tile_m=1024)

    # Multi-tile path: 4 M-tiles -> exercises the per-tile partial stats + both fully
    # "parallel" passes; stores z in bf16 (halved round-trip), so the tolerance covers
    # the ~2^-9 relative rounding of the stored conv output.
    _run_case(k2, N=4, C_in=4, L=64, C_out=8, K=3, stride=2, padding=1,
              tile_m=32, z_dtype=jnp.bfloat16, random_affine=True,
              atol=5e-2, rtol=5e-2)

    print("KERNEL_OK")
</pallas_src>

<mosaic_0001>
module attributes {stable_mosaic.version = 11 : i64} {
  func.func @_conv_stats_kernel(%arg0: i32, %arg1: memref<16x16xbf16, #tpu.memory_space<vmem>>, %arg2: memref<16x128xbf16, #tpu.memory_space<vmem>>, %arg3: memref<16x128xf32, #tpu.memory_space<vmem>>, %arg4: memref<1x2x8x128xf32, #tpu.memory_space<vmem>>) attributes {dimension_semantics = [#tpu.dimension_semantics<parallel>], iteration_bounds = array<i64: 1>, scalar_prefetch = 0 : i64, scratch_operands = 0 : i64, tpu.core_type = #tpu.core_type<tc>, window_params = [{transform_indices = @transform_0, window_bounds = array<i64: 16, 16>}, {pipeline_mode = #tpu.pipeline_mode<synchronous>, transform_indices = @transform_1, window_bounds = array<i64: 16, 128>}, {transform_indices = @transform_2, window_bounds = array<i64: 16, 128>}, {transform_indices = @transform_3, window_bounds = array<i64: 1, 2, 8, 128>}]} {
    %c0 = arith.constant 0 : index
    %c0_0 = arith.constant 0 : index
    %0 = vector.load %arg1[%c0, %c0_0] : memref<16x16xbf16, #tpu.memory_space<vmem>>, vector<16x16xbf16>
    %c0_1 = arith.constant 0 : index
    %c0_2 = arith.constant 0 : index
    %1 = vector.load %arg2[%c0_1, %c0_2] : memref<16x128xbf16, #tpu.memory_space<vmem>>, vector<16x128xbf16>
    %cst = arith.constant dense<0.000000e+00> : vector<16x128xf32>
    %2 = tpu.matmul %0, %1, %cst {dimension_numbers = #tpu.dot_dimension_numbers<[1], [0], [0], [1], [0, 0, 1, 1], [], []>} : vector<16x16xbf16>, vector<16x128xbf16>, vector<16x128xf32> -> vector<16x128xf32>
    %c0_3 = arith.constant 0 : index
    %c0_4 = arith.constant 0 : index
    %3 = vector.load %arg3[%c0_3, %c0_4] : memref<16x128xf32, #tpu.memory_space<vmem>>, vector<16x128xf32>
    tpu.vector_store %arg3[%c0_3, %c0_4], %2 {strides = array<i32>} : memref<16x128xf32, #tpu.memory_space<vmem>>, vector<16x128xf32>,
    %4 = vector.shape_cast %2 : vector<16x128xf32> to vector<2x8x128xf32>
    %cst_5 = arith.constant dense<0.000000e+00> : vector<8x128xf32>
    %5 = vector.multi_reduction <add>, %4, %cst_5 [0] : vector<2x8x128xf32> to vector<8x128xf32>
    %c0_6 = arith.constant 0 : index
    %c0_7 = arith.constant 0 : index
    %c0_8 = arith.constant 0 : index
    %c0_9 = arith.constant 0 : index
    %6 = vector.load %arg4[%c0_6, %c0_7, %c0_8, %c0_9] : memref<1x2x8x128xf32, #tpu.memory_space<vmem>>, vector<1x1x8x128xf32>
    %7 = vector.shape_cast %6 : vector<1x1x8x128xf32> to vector<8x128xf32>
    %8 = vector.shape_cast %5 : vector<8x128xf32> to vector<1x1x8x128xf32>
    tpu.vector_store %arg4[%c0_6, %c0_7, %c0_8, %c0_9], %8 {strides = array<i32>} : memref<1x2x8x128xf32, #tpu.memory_space<vmem>>, vector<1x1x8x128xf32>,
    %9 = arith.mulf %4, %4 : vector<2x8x128xf32>
    %cst_10 = arith.constant dense<0.000000e+00> : vector<8x128xf32>
    %10 = vector.multi_reduction <add>, %9, %cst_10 [0] : vector<2x8x128xf32> to vector<8x128xf32>
    %c0_11 = arith.constant 0 : index
    %c1 = arith.constant 1 : index
    %c0_12 = arith.constant 0 : index
    %c0_13 = arith.constant 0 : index
    %11 = vector.load %arg4[%c0_11, %c1, %c0_12, %c0_13] : memref<1x2x8x128xf32, #tpu.memory_space<vmem>>, vector<1x1x8x128xf32>
    %12 = vector.shape_cast %11 : vector<1x1x8x128xf32> to vector<8x128xf32>
    %13 = vector.shape_cast %10 : vector<8x128xf32> to vector<1x1x8x128xf32>
    tpu.vector_store %arg4[%c0_11, %c1, %c0_12, %c0_13], %13 {strides = array<i32>} : memref<1x2x8x128xf32, #tpu.memory_space<vmem>>, vector<1x1x8x128xf32>,
    return
  }
  func.func @transform_0(%arg0: i32) -> (i32, i32) {
    %c0_i32 = arith.constant 0 : i32
    %c0_i32_0 = arith.constant 0 : i32
    return %arg0, %c0_i32 : i32, i32
  }
  func.func @transform_1(%arg0: i32) -> (i32, i32) {
    %c0_i32 = arith.constant 0 : i32
    %c0_i32_0 = arith.constant 0 : i32
    %c0_i32_1 = arith.constant 0 : i32
    return %c0_i32, %c0_i32_0 : i32, i32
  }
  func.func @transform_2(%arg0: i32) -> (i32, i32) {
    %c0_i32 = arith.constant 0 : i32
    %c0_i32_0 = arith.constant 0 : i32
    return %arg0, %c0_i32 : i32, i32
  }
  func.func @transform_3(%arg0: i32) -> (i32, i32, i32, i32) {
    %c0_i32 = arith.constant 0 : i32
    %c0_i32_0 = arith.constant 0 : i32
    %c0_i32_1 = arith.constant 0 : i32
    %c0_i32_2 = arith.constant 0 : i32
    return %arg0, %c0_i32, %c0_i32_0, %c0_i32_1 : i32, i32, i32, i32
  }
}

</mosaic_0001>

<bundles_post_ra>
// kernel: tpu_custom_call.1
= control target key start
LH: loop header
LB: loop body
LE: loop exit
PB: predicated region body
PF: predicated region fallthrough
CT: control target
= control target key end

     0   :  { %9 = vsyncpa [#allocation3], 0  ;;  %s344_s0 = inlined_call_operand.hbm [shape: bf16[16,16], index: 0, kind: input, shape index: {}]   ;;  %s345_s1 = inlined_call_operand.hbm [shape: bf16[16,128], index: 1, kind: input, shape index: {}]   ;;  %s346_s2 = inlined_call_operand.hbm [shape: f32[16,128], index: 2, kind: output, shape index: {0}]   ;;  %s347_s3 = inlined_call_operand.hbm [shape: f32[1,2,8,128], index: 3, kind: output, shape index: {1}]  }
   0x1   :  { %10 = vsyncpa [#allocation6], 0 }
   0x2   :  { %11 = vsyncpa [#allocation4], 0 }
   0x3   :  { %12 = vsyncpa [#allocation9], 0  ;;  %s266_s12 = smov [#allocation2]   ;;  %s170_s16 = scalar_lea.hbm %s344_s0, 128 }
   0x4   :  { %s18_s13 = sshll.u32 %s266_s12, 4  ;;  %p171_p0 = scmp.ne.s32.totalorder %s344_s0, %s170_s16  ;;  %s19_s13 = int_to_ptr.vmem [resolvable:$true] %s18_s13 }
   0x5   :  { %p174_p1 = scmp.lt.u32.totalorder %s170_s16, %s344_s0 }
   0x7   :  { %p176_p2 = pnand %p174_p1, %p171_p0 }
   0x9   :  { %179 = shalt.err (!%p176_p2)
}
   0xa   :  { %s180_s21 = scalar_lea.vmem %s19_s13, 128  ;;  %p185_p4 = scmp.lt.s32.totalorder %s19_s13, %s19_s13 }
   0xb   :  { %p181_p3 = scmp.ne.s32.totalorder %s19_s13, %s180_s21  ;;  %p186_p5 = scmp.lt.s32.totalorder %s180_s21, %s180_s21 }
   0xd   :  { %p187_p6 = por %p186_p5, %p185_p4 }
   0xf   :  { %p188_p7 = pnand %p187_p6, %p181_p3 }
  0x11   :  { %191 = shalt.err (!%p188_p7)
}
  0x12   :  { %s267_s22 = smov 64   ;;  %s268_s23 = smov 4  }
  0x13   :  { %24 = dma.hbm_to_vmem [thread:$0]  %s344_s0, 128, %s19_s13, [#allocation3], %s267_s22, %s267_s22, %s268_s23  }
  0x14   :  { %s269_s26 = smov [#allocation5]   ;;  %s192_s30 = scalar_lea.hbm %s345_s1, 128 }
  0x15   :  { %s30_s27 = sshll.u32 %s269_s26, 4  ;;  %p193_p8 = scmp.ne.s32.totalorder %s345_s1, %s192_s30  ;;  %s31_s27 = int_to_ptr.vmem [resolvable:$true] %s30_s27 }
  0x16   :  { %p196_p9 = scmp.lt.u32.totalorder %s192_s30, %s345_s1 }
  0x18   :  { %p198_p10 = pnand %p196_p9, %p193_p8 }
  0x1a   :  { %201 = shalt.err (!%p198_p10)
}
  0x1b   :  { %s202_s8 = scalar_lea.vmem %s31_s27, 128  ;;  %p207_p12 = scmp.lt.s32.totalorder %s31_s27, %s31_s27 }
  0x1c   :  { %p203_p11 = scmp.ne.s32.totalorder %s31_s27, %s202_s8  ;;  %p208_p13 = scmp.lt.s32.totalorder %s202_s8, %s202_s8 }
  0x1e   :  { %p209_p0 = por %p208_p13, %p207_p12 }
  0x20   :  { %p210_p1 = pnand %p209_p0, %p203_p11 }
  0x22   :  { %213 = shalt.err (!%p210_p1)
}
  0x23   :  { %36 = dma.hbm_to_vmem [thread:$0]  %s345_s1, 128, %s31_s27, [#allocation6], %s267_s22, %s267_s22, %s268_s23  }
  0x24   :  { %258 = dma.done.wait [#allocation3], 128  }
  0x25   :  { %259 = vsyncadd [#allocation3], 4294967168 }
  0x26   :  { %260 = dma.done.wait [#allocation6], 128  }
  0x27   :  { %261 = vsyncadd [#allocation6], 4294967168  ;;  %v270_v0 = vmov 0.0   ;;  %vm271_vm0 = vmmov 0   ;;  %v168_v1 = vld [vmem:[#allocation5] sm:$0xff]   ;;  %v169_v2 = vld [vmem:[#allocation2] sm:$0xff]  }
  0x28   :  { %152 = vmatprep.subr.bf16.mxu0 %v270_v0  ;;  %154 = vmatprep.mubr.msk.bf16.mxu0 %vm271_vm0, %v270_v0  ;;  %vm59_vm1 = vcmask 130048   ;;  %s272_s10 = smov [#allocation7]   ;;  %s273_s1 = smov [#allocation8]  }
  0x29   :  { %153 = vmatpush3.bf16.msra.mxu0 %v168_v1  ;;  %s118_s11 = sshll.u32 %s272_s10, 4  ;;  %s130_s12 = sshll.u32 %s273_s1, 4  ;;  %s119_s11 = int_to_ptr.vmem [resolvable:$true] %s118_s11  ;;  %s131_s12 = int_to_ptr.vmem [resolvable:$true] %s130_s12 }
  0x2a   :  { %s214_s13 = scalar_lea.vmem %s119_s11, 256  ;;  %p219_p3 = scmp.lt.s32.totalorder %s119_s11, %s119_s11 }
  0x2b   :  { %p215_p2 = scmp.ne.s32.totalorder %s119_s11, %s214_s13  ;;  %p220_p4 = scmp.lt.s32.totalorder %s214_s13, %s214_s13 }
  0x2c   :  { %155 = vmatmul.mubr.msk.bf16.vlgmr.msra.gmra.mrb[0].mxu0 %vm59_vm1, %v169_v2 }
  0x2d   :  { %p221_p5 = por %p220_p4, %p219_p3 }
  0x2f   :  { %p222_p6 = pnand %p221_p5, %p215_p2 }
  0xff   :  { %v97_v3 = vpop.f32.mrb[0].mxu0 }
 0x100   :  { %104 = vst [vmem:[#allocation7] sm:$0xff] %v97_v3  ;;  %v156_v4 = vpop.f32.mrb[1].mxu0  ;;  %v108_v6 = vmul.f32 %v97_v3, %v97_v3 }
 0x101   :  { %v100_v5 = vpop.f32.mrb[2].mxu0 }
 0x102   :  { %105 = vst [vmem:[#allocation7 + $0x8] sm:$0xff] %v100_v5  ;;  %v106_v7 = vadd.f32 %v100_v5, %v97_v3  ;;  %v109_v8 = vmul.f32 %v100_v5, %v100_v5  ;;  %v157_v9 = vpop.f32.mrb[3].mxu0 }
 0x103   :  { %225 = shalt.err (!%p222_p6)
}
 0x104   :  { %s226_s16 = scalar_lea.hbm %s346_s2, 256 }
 0x105   :  { %p227_p7 = scmp.ne.s32.totalorder %s346_s2, %s226_s16  ;;  %p230_p8 = scmp.lt.u32.totalorder %s226_s16, %s346_s2 }
 0x107   :  { %p232_p9 = pnand %p230_p8, %p227_p7 }
 0x109   :  { %235 = shalt.err (!%p232_p9)
}
 0x10a   :  { %s274_s21 = smov 128   ;;  %s275_s22 = smov 8   ;;  %107 = vst [vmem:[#allocation8] sm:$0xff] %v106_v7  ;;  %v110_v10 = vadd.f32 %v109_v8, %v108_v6 }
 0x10b   :  { %124 = dma.vmem_to_hbm [thread:$0]  %s119_s11, 256, %s346_s2, [#allocation4], %s274_s21, %s274_s21, %s275_s22  }
 0x10c   :  { %112 = vst [vmem:[#allocation8 + $0x8] sm:$0xff] %v110_v10  ;;  %s236_s25 = scalar_lea.vmem %s131_s12, 256  ;;  %p241_p11 = scmp.lt.s32.totalorder %s131_s12, %s131_s12 }
 0x10d   :  { %p237_p10 = scmp.ne.s32.totalorder %s131_s12, %s236_s25  ;;  %p242_p12 = scmp.lt.s32.totalorder %s236_s25, %s236_s25 }
 0x10f   :  { %p243_p13 = por %p242_p12, %p241_p11 }
 0x111   :  { %p244_p0 = pnand %p243_p13, %p237_p10 }
 0x113   :  { %247 = shalt.err (!%p244_p0)
}
 0x114   :  { %s248_s28 = scalar_lea.hbm %s347_s3, 256 }
 0x115   :  { %p249_p1 = scmp.ne.s32.totalorder %s347_s3, %s248_s28  ;;  %p252_p2 = scmp.lt.u32.totalorder %s248_s28, %s347_s3 }
 0x117   :  { %p254_p3 = pnand %p252_p2, %p249_p1 }
 0x119   :  { %257 = shalt.err (!%p254_p3)
}
 0x11a   :  { %136 = dma.vmem_to_hbm [thread:$0]  %s131_s12, 256, %s347_s3, [#allocation9], %s274_s21, %s274_s21, %s275_s22  }
 0x11b   :  { %262 = dma.done.wait [#allocation4], 256  }
 0x11c   :  { %263 = vsyncadd [#allocation4], 4294967040 }
 0x11d   :  { %264 = dma.done.wait [#allocation9], 256  }
 0x11e   :  { %265 = vsyncadd [#allocation9], 4294967040 }
 0x11f   :  { %143 = vsyncpa [#allocation3], 1 }
 0x120   :  { %144 = vsyncpa [#allocation6], 1 }
 0x121   :  { %145 = vsyncpa [#allocation4], 1 }
 0x122   :  { %146 = vsyncpa [#allocation9], 1 }

</bundles_post_ra>
